<compile_context>
chip_gen: v7x
topology: tpu7x:2x2x1
jax: 0.10.0
libtpu: 0.0.40
codegen_flags: <defaults>
</compile_context>

<pallas_src>
import functools

import jax
import jax.numpy as jnp
from jax.experimental import pallas as pl
from jax.experimental.pallas import tpu as pltpu


def _round_up(x: int, m: int) -> int:
    return ((x + m - 1) // m) * m


def _mlp_kernel(x_ref, w1_ref, b1_ref, w2_ref, b2_ref, o_ref):
    # Layer 1: cast the x tile to the MXU operand dtype in-register (no-op for
    # f32), matmul with f32 accumulation; bias + ReLU on the VPU in f32.
    x = x_ref[...].astype(w1_ref.dtype)
    h = jnp.dot(x, w1_ref[...], preferred_element_type=jnp.float32)
    h = jnp.maximum(h + b1_ref[...], 0.0)            # (tm, H) + (1, H)

    # Layer 2: cast activation to the matmul operand dtype; accumulate in f32.
    z = jnp.dot(h.astype(w2_ref.dtype), w2_ref[...],
                preferred_element_type=jnp.float32)
    z = z + b2_ref[...]                              # (tm, O) + (1, O)

    # Numerically stable LogSigmoid:
    #   log(sigmoid(z)) = min(z, 0) - log1p(exp(-|z|))
    # exp / log1p hit the EUP slot; min/abs/sub are cheap VPU ops.
    out = jnp.minimum(z, 0.0) - jnp.log1p(jnp.exp(-jnp.abs(z)))
    o_ref[...] = out.astype(o_ref.dtype)


def prepare_cell_params(w1, b1, w2, b2, *, matmul_dtype=jnp.float32):
    """One-time parameter preparation (hoisted out of the per-call path).

    Casts the weights to the MXU operand dtype and reshapes the biases to
    (1, N) f32 rows so the kernel can broadcast them directly.
    """
    return (
        w1.astype(matmul_dtype),
        b1.astype(jnp.float32).reshape(1, -1),
        w2.astype(matmul_dtype),
        b2.astype(jnp.float32).reshape(1, -1),
    )


def _pick_tm(M: int) -> int:
    # >= 4 grid steps when the batch allows (so v7x's 2 TensorCores each get
    # >= 2 pipelined steps), but never shrink tiles below 256 rows: measured
    # pipelining data shows a steep roofline drop below 256 due to the
    # ~0.35 us per-step overhead.  Small batches use a single tile.
    if M <= 256:
        return _round_up(M, 8)
    return max(256, min(512, _round_up(M // 4, 8)))


def cell_forward(x, params, *, tm=None):
    """Fused MLP cell forward pass.

    x      : (M, input_sz) float32
    params : output of prepare_cell_params()
    returns: (M, output_sz) float32
    """
    w1, b1, w2, b2 = params
    M, Kin = x.shape
    H = w1.shape[1]
    O = w2.shape[1]

    if tm is None:
        tm = _pick_tm(M)
    Mp = _round_up(M, tm)
    if Mp != M:
        # Row padding only (zero rows, sliced off below); no column padding.
        x = jnp.pad(x, ((0, Mp - M), (0, 0)))

    grid = (Mp // tm,)

    w_item = jnp.dtype(w1.dtype).itemsize
    cost = pl.CostEstimate(
        flops=2 * Mp * (Kin * H + H * O),
        transcendentals=2 * Mp * O,                  # exp + log1p per output
        bytes_accessed=(Mp * Kin * jnp.dtype(x.dtype).itemsize   # x
                        + Kin * H * w_item                       # W1
                        + H * O * w_item                         # W2
                        + (H + O) * 4                            # biases
                        + Mp * O * 4),                           # output
    )

    out = pl.pallas_call(
        _mlp_kernel,
        out_shape=jax.ShapeDtypeStruct((Mp, O), jnp.float32),
        grid_spec=pltpu.PrefetchScalarGridSpec(
            num_scalar_prefetch=0,
            grid=grid,
            in_specs=[
                pl.BlockSpec((tm, Kin), lambda i: (i, 0)),   # x tile
                pl.BlockSpec((Kin, H), lambda i: (0, 0)),    # W1 (resident)
                pl.BlockSpec((1, H), lambda i: (0, 0)),      # b1 (resident)
                pl.BlockSpec((H, O), lambda i: (0, 0)),      # W2 (resident)
                pl.BlockSpec((1, O), lambda i: (0, 0)),      # b2 (resident)
            ],
            out_specs=pl.BlockSpec((tm, O), lambda i: (i, 0)),
        ),
        compiler_params=pltpu.CompilerParams(
            dimension_semantics=("parallel",),
        ),
        cost_estimate=cost,
    )(x, w1, b1, w2, b2)

    if Mp != M:
        out = out[:M]
    return out


def _ref_forward(x, w1, b1, w2, b2):
    """Pure-JAX reference mirroring the PyTorch module."""
    a = jnp.maximum(x @ w1 + b1, 0.0)
    z = a @ w2 + b2
    return jnp.minimum(z, 0.0) - jnp.log1p(jnp.exp(-jnp.abs(z)))


if __name__ == "__main__":
    # Shapes consistent with the module's forward; batch large enough for a
    # 4-step grid (2 steps per v7x TensorCore) with 256-row tiles.
    batch, input_sz, hidden_sz, output_sz = 1024, 32, 64, 32

    key = jax.random.PRNGKey(0)
    kx, kw1, kw2 = jax.random.split(key, 3)

    x = jax.random.normal(kx, (batch, input_sz), dtype=jnp.float32)

    # Parameter init matching torch.randn(...) / sqrt(fan_in), zero biases.
    w1 = jax.random.normal(kw1, (input_sz, hidden_sz), dtype=jnp.float32) / jnp.sqrt(
        jnp.float32(input_sz)
    )
    b1 = jnp.zeros((hidden_sz,), dtype=jnp.float32)
    w2 = jax.random.normal(kw2, (hidden_sz, output_sz), dtype=jnp.float32) / jnp.sqrt(
        jnp.float32(hidden_sz)
    )
    b2 = jnp.zeros((output_sz,), dtype=jnp.float32)

    ref = _ref_forward(x, w1, b1, w2, b2)

    # Default (validated) path: f32 MXU operands — strict correctness check.
    params_f32 = prepare_cell_params(w1, b1, w2, b2)          # f32 default
    fwd_f32 = jax.jit(functools.partial(cell_forward, params=params_f32))
    out_f32 = jax.block_until_ready(fwd_f32(x))
    assert out_f32.shape == (batch, output_sz)
    assert jnp.allclose(out_f32, ref, atol=1e-5, rtol=1e-5), "f32 mismatch vs reference"

    # Explicit opt-in fast path (v6e/v7x): bf16 MXU operands, f32 accumulation.
    params_bf16 = prepare_cell_params(w1, b1, w2, b2, matmul_dtype=jnp.bfloat16)
    fwd_bf16 = jax.jit(functools.partial(cell_forward, params=params_bf16))
    out_bf16 = jax.block_until_ready(fwd_bf16(x))
    assert out_bf16.shape == (batch, output_sz)
    assert jnp.allclose(out_bf16, ref, atol=5e-2, rtol=5e-2), "bf16 mismatch vs reference"

    print("KERNEL_OK")
</pallas_src>

<mosaic_0001>
module attributes {stable_mosaic.version = 11 : i64} {
  func.func @_mlp_kernel(%arg0: i32, %arg1: memref<256x32xf32, #tpu.memory_space<vmem>>, %arg2: memref<32x64xf32, #tpu.memory_space<vmem>>, %arg3: memref<1x64xf32, #tpu.memory_space<vmem>>, %arg4: memref<64x32xf32, #tpu.memory_space<vmem>>, %arg5: memref<1x32xf32, #tpu.memory_space<vmem>>, %arg6: memref<256x32xf32, #tpu.memory_space<vmem>>) attributes {dimension_semantics = [#tpu.dimension_semantics<parallel>], iteration_bounds = array<i64: 4>, scalar_prefetch = 0 : i64, scratch_operands = 0 : i64, tpu.core_type = #tpu.core_type<tc>, window_params = [{transform_indices = @transform_0, window_bounds = array<i64: 256, 32>}, {pipeline_mode = #tpu.pipeline_mode<synchronous>, transform_indices = @transform_1, window_bounds = array<i64: 32, 64>}, {pipeline_mode = #tpu.pipeline_mode<synchronous>, transform_indices = @transform_2, window_bounds = array<i64: 1, 64>}, {pipeline_mode = #tpu.pipeline_mode<synchronous>, transform_indices = @transform_3, window_bounds = array<i64: 64, 32>}, {pipeline_mode = #tpu.pipeline_mode<synchronous>, transform_indices = @transform_4, window_bounds = array<i64: 1, 32>}, {transform_indices = @transform_5, window_bounds = array<i64: 256, 32>}]} {
    %c0 = arith.constant 0 : index
    %c0_0 = arith.constant 0 : index
    %0 = vector.load %arg1[%c0, %c0_0] : memref<256x32xf32, #tpu.memory_space<vmem>>, vector<256x32xf32>
    %c0_1 = arith.constant 0 : index
    %c0_2 = arith.constant 0 : index
    %1 = vector.load %arg2[%c0_1, %c0_2] : memref<32x64xf32, #tpu.memory_space<vmem>>, vector<32x64xf32>
    %cst = arith.constant dense<0.000000e+00> : vector<256x64xf32>
    %2 = tpu.matmul %0, %1, %cst {dimension_numbers = #tpu.dot_dimension_numbers<[1], [0], [0], [1], [0, 0, 1, 1], [], []>} : vector<256x32xf32>, vector<32x64xf32>, vector<256x64xf32> -> vector<256x64xf32>
    %c0_3 = arith.constant 0 : index
    %c0_4 = arith.constant 0 : index
    %3 = vector.load %arg3[%c0_3, %c0_4] : memref<1x64xf32, #tpu.memory_space<vmem>>, vector<1x64xf32>
    %4 = vector.broadcast %3 : vector<1x64xf32> to vector<256x64xf32>
    %5 = arith.addf %2, %4 : vector<256x64xf32>
    %cst_5 = arith.constant 0.000000e+00 : f32
    %6 = vector.broadcast %cst_5 : f32 to vector<256x64xf32>
    %7 = arith.maximumf %5, %6 : vector<256x64xf32>
    %c0_6 = arith.constant 0 : index
    %c0_7 = arith.constant 0 : index
    %8 = vector.load %arg4[%c0_6, %c0_7] : memref<64x32xf32, #tpu.memory_space<vmem>>, vector<64x32xf32>
    %cst_8 = arith.constant dense<0.000000e+00> : vector<256x32xf32>
    %9 = tpu.matmul %7, %8, %cst_8 {dimension_numbers = #tpu.dot_dimension_numbers<[1], [0], [0], [1], [0, 0, 1, 1], [], []>} : vector<256x64xf32>, vector<64x32xf32>, vector<256x32xf32> -> vector<256x32xf32>
    %c0_9 = arith.constant 0 : index
    %c0_10 = arith.constant 0 : index
    %10 = vector.load %arg5[%c0_9, %c0_10] : memref<1x32xf32, #tpu.memory_space<vmem>>, vector<1x32xf32>
    %11 = vector.broadcast %10 : vector<1x32xf32> to vector<256x32xf32>
    %12 = arith.addf %9, %11 : vector<256x32xf32>
    %cst_11 = arith.constant 0.000000e+00 : f32
    %13 = vector.broadcast %cst_11 : f32 to vector<256x32xf32>
    %14 = arith.minimumf %12, %13 : vector<256x32xf32>
    %15 = math.absf %12 : vector<256x32xf32>
    %cst_12 = arith.constant 0.000000e+00 : f32
    %16 = vector.broadcast %cst_12 : f32 to vector<256x32xf32>
    %17 = arith.subf %16, %15 : vector<256x32xf32>
    %18 = math.exp %17 : vector<256x32xf32>
    %19 = math.log1p %18 : vector<256x32xf32>
    %20 = arith.subf %14, %19 : vector<256x32xf32>
    %c0_13 = arith.constant 0 : index
    %c0_14 = arith.constant 0 : index
    %21 = vector.load %arg6[%c0_13, %c0_14] : memref<256x32xf32, #tpu.memory_space<vmem>>, vector<256x32xf32>
    tpu.vector_store %arg6[%c0_13, %c0_14], %20 {strides = array<i32>} : memref<256x32xf32, #tpu.memory_space<vmem>>, vector<256x32xf32>,
    return
  }
  func.func @transform_0(%arg0: i32) -> (i32, i32) {
    %c0_i32 = arith.constant 0 : i32
    %c0_i32_0 = arith.constant 0 : i32
    return %arg0, %c0_i32 : i32, i32
  }
  func.func @transform_1(%arg0: i32) -> (i32, i32) {
    %c0_i32 = arith.constant 0 : i32
    %c0_i32_0 = arith.constant 0 : i32
    %c0_i32_1 = arith.constant 0 : i32
    return %c0_i32, %c0_i32_0 : i32, i32
  }
  func.func @transform_2(%arg0: i32) -> (i32, i32) {
    %c0_i32 = arith.constant 0 : i32
    %c0_i32_0 = arith.constant 0 : i32
    %c0_i32_1 = arith.constant 0 : i32
    return %c0_i32, %c0_i32_0 : i32, i32
  }
  func.func @transform_3(%arg0: i32) -> (i32, i32) {
    %c0_i32 = arith.constant 0 : i32
    %c0_i32_0 = arith.constant 0 : i32
    %c0_i32_1 = arith.constant 0 : i32
    return %c0_i32, %c0_i32_0 : i32, i32
  }
  func.func @transform_4(%arg0: i32) -> (i32, i32) {
    %c0_i32 = arith.constant 0 : i32
    %c0_i32_0 = arith.constant 0 : i32
    %c0_i32_1 = arith.constant 0 : i32
    return %c0_i32, %c0_i32_0 : i32, i32
  }
  func.func @transform_5(%arg0: i32) -> (i32, i32) {
    %c0_i32 = arith.constant 0 : i32
    %c0_i32_0 = arith.constant 0 : i32
    return %arg0, %c0_i32 : i32, i32
  }
}

</mosaic_0001>

<bundles_post_ra>
// kernel: cell_forward.1
= control target key start
LH: loop header
LB: loop body
LE: loop exit
PB: predicated region body
PF: predicated region fallthrough
CT: control target
= control target key end

     0   :  { %s2009_s18 = smov 0   ;;  %s2722_s0 = inlined_call_operand.vmem [shape: f32[1024,32], index: 0, kind: input, shape index: {}]   ;;  %s2723_s1 = inlined_call_operand.vmem [shape: f32[32,64], index: 1, kind: input, shape index: {}]   ;;  %s2724_s2 = inlined_call_operand.vmem [shape: f32[1,64], index: 2, kind: input, shape index: {}]   ;;  %s2725_s3 = inlined_call_operand.vmem [shape: f32[64,32], index: 3, kind: input, shape index: {}]   ;;  %s2726_s4 = inlined_call_operand.vmem [shape: f32[1,32], index: 4, kind: input, shape index: {}]   ;;  %s2727_s5 = inlined_call_operand.vmem [shape: f32[1024,32], index: 5, kind: output, shape index: {}]  }
   0x1 LB: > { %s1530_s19 = sadd.s32 4294967295, %s1977_s18   ;;  %p1534_p0 = scmp.ge.s32.totalorder %s1977_s18, 1  ;;  %s1977_s18 = sphi %s2009_s18, %s15_s18  }
   0x2   : > { %p188_p1 = scmp.lt.s32.totalorder %s1977_s18, 5 }
   0x4   : > { %p189_p2 = pnand %p1534_p0, %p188_p1 }
   0x5   : > { %v260_v0 = vld [vmem:[%s2723_s1] sm:$0xff] (!%p189_p2)  ;;  %v261_v1 = vld [vmem:[%s2723_s1 + $0x8] sm:$0xff] (!%p189_p2)  ;;  %v262_v2 = vld [vmem:[%s2723_s1 + $0x10] sm:$0xff] (!%p189_p2)  ;;  %s1535_s26 = sshll.u32 (!%p189_p2), %s1530_s19, 5  ;;  %vm271_vm0 = vcmask (!%p189_p2), 261120   ;;  %vm640_vm1 = vcmask (!%p189_p2), 523264  }
   0x6   : > { %192 = sbr.rel (%p189_p2) target bundleno = 597 (0x255), region = 40  ;;  %v1803_v3 = vpack.c.bf16 (!%p189_p2), %v261_v1, %v260_v0  ;;  %v263_v4 = vld [vmem:[%s2723_s1 + $0x18] sm:$0xff] (!%p189_p2)  ;;  %p217_p3 = scmp.lt.s32.totalorder (!%p189_p2), %s1535_s26, 127  ;;  %v625_v5 = vld [vmem:[%s2725_s3] sm:$0xff] (!%p189_p2)  ;;  %v626_v6 = vld [vmem:[%s2725_s3 + $0x8] sm:$0xff] (!%p189_p2) }
   0x7   : > { %v1807_v7 = vpack.c.bf16 (!%p189_p2), %v263_v4, %v262_v2  ;;  %v1811_v8 = vpack.c.bf16 (!%p189_p2), %v626_v6, %v625_v5  ;;  %v627_v9 = vld [vmem:[%s2725_s3 + $0x10] sm:$0xff] (!%p189_p2)  ;;  %v628_v10 = vld [vmem:[%s2725_s3 + $0x18] sm:$0xff] (!%p189_p2)  ;;  %v629_v12 = vld [vmem:[%s2725_s3 + $0x20] sm:$0xff] (!%p189_p2) }
   0x8   : > { %1804 = vmatprep.subr.bf16.mxu0 (!%p189_p2), %v1803_v3  ;;  %v1815_v11 = vpack.c.bf16 (!%p189_p2), %v628_v10, %v627_v9  ;;  %v630_v13 = vld [vmem:[%s2725_s3 + $0x28] sm:$0xff] (!%p189_p2)  ;;  %v631_v47 = vld [vmem:[%s2725_s3 + $0x30] sm:$0xff] (!%p189_p2)  ;;  %v632_v48 = vld [vmem:[%s2725_s3 + $0x38] sm:$0xff] (!%p189_p2) }
   0x9   : > { %1806 = vmatpush3.bf16.msra.mxu0 (!%p189_p2), %v1803_v3  ;;  %1827 = vmatprep.subr.bf16.mxu1 (!%p189_p2), %v1811_v8  ;;  %v1819_v16 = vpack.c.bf16 (!%p189_p2), %v630_v13, %v629_v12  ;;  %v1823_v49 = vpack.c.bf16 (!%p189_p2), %v632_v48, %v631_v47  ;;  %v2130_v50 = vld [vmem:[%s2724_s2] ss:$0 sm:$0xff] (!%p189_p2) }
   0xa   : > { %1808 = vmatprep.subr.bf16.mxu0 (!%p189_p2), %v1807_v7  ;;  %1831 = vmatpush3.bf16.msra.mxu1 (!%p189_p2), %v1811_v8 }
   0xb   : > { %1828 = vmatprep.subr.bf16.mxu1 (!%p189_p2), %v1815_v11 }
   0xd   : > { %s2763_s26 = smov (!%p217_p3, %s1535_s26), 127  ;;  %1810 = vmatpush3.bf16.msra.mxu0 %v1807_v7 }
   0xe   : > { %s1536_s12 = sshll.u32 %s2763_s26, 3  ;;  %1812 = vmatprep.subr.bf16.mxu0 %v1811_v8  ;;  %1832 = vmatpush3.bf16.msra.mxu1 %v1815_v11 }
   0xf   : > { %s2055_s20 = scalar_lea.vmem %s2722_s0, %s1536_s12  ;;  %1829 = vmatprep.subr.bf16.mxu1 %v1819_v16  ;;  %s2294_s7 = scalar_lea.vmem %s2727_s5, %s1536_s12 }
  0x10   : > { %v228_v14 = vld [vmem:[%s2055_s20] sm:$0xff]  ;;  %v229_v15 = vld [vmem:[%s2055_s20 + $0x8] sm:$0xff]  ;;  %v230_v17 = vld [vmem:[%s2055_s20 + $0x10] sm:$0xff] }
  0x11   : > { %1691 = vmatprep.mubr.msk.f32.mxu0 %vm271_vm0, %v228_v14  ;;  %v231_v18 = vld [vmem:[%s2055_s20 + $0x18] sm:$0xff]  ;;  %v232_v19 = vld [vmem:[%s2055_s20 + $0x20] sm:$0xff]  ;;  %v233_v20 = vld [vmem:[%s2055_s20 + $0x28] sm:$0xff] }
  0x12   : > { %1692 = vmatmul.mubr.msk.f32.vlgmr.msra.gmra.mrb[0].mxu0 %vm271_vm0, %v229_v15  ;;  %1833 = vmatpush3.bf16.msra.mxu1 %v1819_v16  ;;  %v234_v21 = vld [vmem:[%s2055_s20 + $0x30] sm:$0xff]  ;;  %v235_v22 = vld [vmem:[%s2055_s20 + $0x38] sm:$0xff]  ;;  %v236_v23 = vld [vmem:[%s2055_s20 + $0x40] sm:$0xff] }
  0x13   : > { %1694 = vmatprep.mubr.msk.f32.mxu0 %vm271_vm0, %v230_v17  ;;  %1814 = vmatpush3.bf16.msra.mxu0 %v1811_v8  ;;  %v237_v24 = vld [vmem:[%s2055_s20 + $0x48] sm:$0xff]  ;;  %v238_v25 = vld [vmem:[%s2055_s20 + $0x50] sm:$0xff]  ;;  %v239_v26 = vld [vmem:[%s2055_s20 + $0x58] sm:$0xff] }
  0x14   : > { %1816 = vmatprep.subr.bf16.mxu0 %v1815_v11  ;;  %v240_v27 = vld [vmem:[%s2055_s20 + $0x60] sm:$0xff]  ;;  %v241_v28 = vld [vmem:[%s2055_s20 + $0x68] sm:$0xff]  ;;  %v242_v29 = vld [vmem:[%s2055_s20 + $0x70] sm:$0xff]  ;;  %1830 = vmatprep.subr.bf16.mxu1 %v1823_v49 }
  0x15   : > { %v243_v30 = vld [vmem:[%s2055_s20 + $0x78] sm:$0xff]  ;;  %v244_v31 = vld [vmem:[%s2055_s20 + $0x80] sm:$0xff]  ;;  %v245_v32 = vld [vmem:[%s2055_s20 + $0x88] sm:$0xff] }
  0x16   : > { %1695 = vmatmul.mubr.msk.f32.gmra.mrb[2].mxu0 %vm271_vm0, %v231_v18  ;;  %v246_v33 = vld [vmem:[%s2055_s20 + $0x90] sm:$0xff]  ;;  %v247_v34 = vld [vmem:[%s2055_s20 + $0x98] sm:$0xff]  ;;  %v248_v35 = vld [vmem:[%s2055_s20 + $0xa0] sm:$0xff]  ;;  %1834 = vmatpush3.bf16.msra.mxu1 %v1823_v49 }
  0x17   : > { %1697 = vmatprep.mubr.msk.f32.mxu0 %vm271_vm0, %v232_v19  ;;  %1818 = vmatpush3.bf16.msra.mxu0 %v1815_v11  ;;  %v249_v36 = vld [vmem:[%s2055_s20 + $0xa8] sm:$0xff]  ;;  %v250_v37 = vld [vmem:[%s2055_s20 + $0xb0] sm:$0xff]  ;;  %v251_v38 = vld [vmem:[%s2055_s20 + $0xb8] sm:$0xff] }
  0x18   : > { %1820 = vmatprep.subr.bf16.mxu0 %v1819_v16  ;;  %v252_v39 = vld [vmem:[%s2055_s20 + $0xc0] sm:$0xff]  ;;  %v253_v40 = vld [vmem:[%s2055_s20 + $0xc8] sm:$0xff]  ;;  %v254_v41 = vld [vmem:[%s2055_s20 + $0xd0] sm:$0xff] }
  0x19   : > { %v255_v42 = vld [vmem:[%s2055_s20 + $0xd8] sm:$0xff]  ;;  %v256_v43 = vld [vmem:[%s2055_s20 + $0xe0] sm:$0xff]  ;;  %v257_v44 = vld [vmem:[%s2055_s20 + $0xe8] sm:$0xff] }
  0x1a   : > { %1698 = vmatmul.mubr.msk.f32.gmra.mrb[4].mxu0 %vm271_vm0, %v233_v20  ;;  %v258_v45 = vld [vmem:[%s2055_s20 + $0xf0] sm:$0xff]  ;;  %v259_v46 = vld [vmem:[%s2055_s20 + $0xf8] sm:$0xff] }
  0x1b   : > { %1700 = vmatprep.mubr.msk.f32.mxu0 %vm271_vm0, %v234_v21  ;;  %1822 = vmatpush3.bf16.msra.mxu0 %v1819_v16 }
  0x1c   : > { %1824 = vmatprep.subr.bf16.mxu0 %v1823_v49 }
  0x1e   : > { %1701 = vmatmul.mubr.msk.f32.gmra.mrb[6].mxu0 %vm271_vm0, %v235_v22 }
  0x1f   : > { %1703 = vmatprep.mubr.msk.f32.mxu0 %vm271_vm0, %v236_v23  ;;  %1826 = vmatpush3.bf16.msra.mxu0 %v1823_v49 }
  0x22   : > { %1704 = vmatmul.mubr.msk.f32.gmra.mrb[8].mxu0 %vm271_vm0, %v237_v24 }
  0x23   : > { %1706 = vmatprep.mubr.msk.f32.mxu0 %vm271_vm0, %v238_v25 }
  0x26   : > { %1707 = vmatmul.mubr.msk.f32.gmra.mrb[10].mxu0 %vm271_vm0, %v239_v26 }
  0x27   : > { %1709 = vmatprep.mubr.msk.f32.mxu0 %vm271_vm0, %v240_v27 }
  0x2a   : > { %1710 = vmatmul.mubr.msk.f32.gmra.mrb[12].mxu0 %vm271_vm0, %v241_v28 }
  0x2b   : > { %1712 = vmatprep.mubr.msk.f32.mxu0 %vm271_vm0, %v242_v29 }
  0x2e   : > { %1713 = vmatmul.mubr.msk.f32.gmra.mrb[14].mxu0 %vm271_vm0, %v243_v30 }
  0x2f   : > { %1715 = vmatprep.mubr.msk.f32.mxu0 %vm271_vm0, %v244_v31 }
  0x32   : > { %1716 = vmatmul.mubr.msk.f32.gmra.mrb[16].mxu0 %vm271_vm0, %v245_v32 }
  0x33   : > { %1718 = vmatprep.mubr.msk.f32.mxu0 %vm271_vm0, %v246_v33 }
  0x36   : > { %1719 = vmatmul.mubr.msk.f32.gmra.mrb[18].mxu0 %vm271_vm0, %v247_v34 }
  0x37   : > { %1721 = vmatprep.mubr.msk.f32.mxu0 %vm271_vm0, %v248_v35 }
  0x3a   : > { %1722 = vmatmul.mubr.msk.f32.gmra.mrb[20].mxu0 %vm271_vm0, %v249_v36 }
  0x3b   : > { %1724 = vmatprep.mubr.msk.f32.mxu0 %vm271_vm0, %v250_v37 }
  0x3e   : > { %1725 = vmatmul.mubr.msk.f32.gmra.mrb[22].mxu0 %vm271_vm0, %v251_v38 }
  0x3f   : > { %1727 = vmatprep.mubr.msk.f32.mxu0 %vm271_vm0, %v252_v39 }
  0x42   : > { %1728 = vmatmul.mubr.msk.f32.gmra.mrb[24].mxu0 %vm271_vm0, %v253_v40 }
  0x43   : > { %1730 = vmatprep.mubr.msk.f32.mxu0 %vm271_vm0, %v254_v41 }
  0x46   : > { %1731 = vmatmul.mubr.msk.f32.gmra.mrb[26].mxu0 %vm271_vm0, %v255_v42 }
  0x47   : > { %1733 = vmatprep.mubr.msk.f32.mxu0 %vm271_vm0, %v256_v43 }
  0x4a   : > { %1734 = vmatmul.mubr.msk.f32.gmra.mrb[28].mxu0 %vm271_vm0, %v257_v44 }
  0x4b   : > { %1736 = vmatprep.mubr.msk.f32.mxu0 %vm271_vm0, %v258_v45 }
  0x4e   : > { %1737 = vmatmul.mubr.msk.f32.gmra.mrb[30].mxu0 %vm271_vm0, %v259_v46 }
  0xe5   : > { %v1693_v51 = vpop.f32.mrb[0].mxu0 }
  0xe6   : > { %v440_v52 = vadd.f32 %v1693_v51, %v2130_v50  ;;  %v434_v53 = vpop.f32.mrb[1].mxu0 }
  0xe7   : > { %v435_v54 = vadd.f32 %v2130_v50, %v434_v53 }
  0xe8   : > { %v594_v57 = vmax.f32 %v440_v52, 0.0 }
  0xe9   : > { %v593_v55 = vmax.f32 %v435_v54, 0.0  ;;  %v1696_v56 = vpop.f32.mrb[2].mxu0 }
  0xea   : > { %v450_v58 = vadd.f32 %v1696_v56, %v2130_v50  ;;  %v444_v59 = vpop.f32.mrb[3].mxu0 }
  0xeb   : > { %v445_v60 = vadd.f32 %v2130_v50, %v444_v59  ;;  %1755 = vmatprep.mubr.msk.f32.mxu0 %vm640_vm1, %v593_v55 }
  0xec   : > { %1756 = vmatmul.mubr.msk.f32.vlgmr.msra.gmra.mrb[32].mxu0 %vm640_vm1, %v594_v57  ;;  %v596_v63 = vmax.f32 %v450_v58, 0.0 }
  0xed   : > { %v595_v61 = vmax.f32 %v445_v60, 0.0  ;;  %v1699_v62 = vpop.f32.mrb[4].mxu0 }
  0xee   : > { %v460_v0 = vadd.f32 %v1699_v62, %v2130_v50  ;;  %v454_v1 = vpop.f32.mrb[5].mxu0 }
  0xef   : > { %v455_v2 = vadd.f32 %v2130_v50, %v454_v1  ;;  %1758 = vmatprep.mubr.msk.f32.mxu1 %vm640_vm1, %v595_v61 }
  0xf0   : > { %1759 = vmatmul.mubr.msk.f32.vlgmr.msra.gmra.mrb[0].mxu1 %vm640_vm1, %v596_v63  ;;  %v598_v5 = vmax.f32 %v460_v0, 0.0 }
  0xf1   : > { %v597_v3 = vmax.f32 %v455_v2, 0.0  ;;  %v1702_v4 = vpop.f32.mrb[6].mxu0 }
  0xf2   : > { %v470_v6 = vadd.f32 %v1702_v4, %v2130_v50  ;;  %v464_v7 = vpop.f32.mrb[7].mxu0 }
  0xf3   : > { %v465_v8 = vadd.f32 %v2130_v50, %v464_v7  ;;  %1761 = vmatprep.mubr.msk.f32.mxu1 %vm640_vm1, %v597_v3 }
  0xf4   : > { %1762 = vmatmul.mubr.msk.f32.gmra.mrb[2].mxu1 %vm640_vm1, %v598_v5  ;;  %v600_v11 = vmax.f32 %v470_v6, 0.0 }
  0xf5   : > { %v599_v9 = vmax.f32 %v465_v8, 0.0  ;;  %v1705_v10 = vpop.f32.mrb[8].mxu0 }
  0xf6   : > { %v480_v12 = vadd.f32 %v1705_v10, %v2130_v50  ;;  %v474_v13 = vpop.f32.mrb[9].mxu0 }
  0xf7   : > { %v475_v14 = vadd.f32 %v2130_v50, %v474_v13  ;;  %1764 = vmatprep.mubr.msk.f32.mxu1 %vm640_vm1, %v599_v9 }
  0xf8   : > { %1765 = vmatmul.mubr.msk.f32.gmra.mrb[4].mxu1 %vm640_vm1, %v600_v11  ;;  %v602_v17 = vmax.f32 %v480_v12, 0.0 }
  0xf9   : > { %v601_v15 = vmax.f32 %v475_v14, 0.0  ;;  %v1708_v16 = vpop.f32.mrb[10].mxu0 }
  0xfa   : > { %v490_v18 = vadd.f32 %v1708_v16, %v2130_v50  ;;  %v484_v19 = vpop.f32.mrb[11].mxu0 }
  0xfb   : > { %v485_v20 = vadd.f32 %v2130_v50, %v484_v19  ;;  %1767 = vmatprep.mubr.msk.f32.mxu1 %vm640_vm1, %v601_v15 }
  0xfc   : > { %1768 = vmatmul.mubr.msk.f32.gmra.mrb[6].mxu1 %vm640_vm1, %v602_v17  ;;  %v604_v23 = vmax.f32 %v490_v18, 0.0 }
  0xfd   : > { %v603_v21 = vmax.f32 %v485_v20, 0.0  ;;  %v1711_v22 = vpop.f32.mrb[12].mxu0  ;;  %v2199_v20 = vld [vmem:[%s2726_s4] ss:$0 sm:$0xff] }
  0xfe   : > { %v500_v24 = vadd.f32 %v1711_v22, %v2130_v50  ;;  %v494_v25 = vpop.f32.mrb[13].mxu0 }
  0xff   : > { %v495_v26 = vadd.f32 %v2130_v50, %v494_v25  ;;  %1770 = vmatprep.mubr.msk.f32.mxu1 %vm640_vm1, %v603_v21 }
 0x100   : > { %1771 = vmatmul.mubr.msk.f32.gmra.mrb[8].mxu1 %vm640_vm1, %v604_v23  ;;  %v606_v29 = vmax.f32 %v500_v24, 0.0 }
 0x101   : > { %v605_v27 = vmax.f32 %v495_v26, 0.0  ;;  %v1714_v28 = vpop.f32.mrb[14].mxu0 }
 0x102   : > { %v510_v30 = vadd.f32 %v1714_v28, %v2130_v50  ;;  %v504_v31 = vpop.f32.mrb[15].mxu0 }
 0x103   : > { %v505_v32 = vadd.f32 %v2130_v50, %v504_v31  ;;  %1773 = vmatprep.mubr.msk.f32.mxu1 %vm640_vm1, %v605_v27 }
 0x104   : > { %1774 = vmatmul.mubr.msk.f32.gmra.mrb[10].mxu1 %vm640_vm1, %v606_v29  ;;  %v608_v35 = vmax.f32 %v510_v30, 0.0 }
 0x105   : > { %v607_v33 = vmax.f32 %v505_v32, 0.0  ;;  %v1717_v34 = vpop.f32.mrb[16].mxu0 }
 0x106   : > { %v520_v36 = vadd.f32 %v1717_v34, %v2130_v50  ;;  %v514_v37 = vpop.f32.mrb[17].mxu0 }
 0x107   : > { %v515_v38 = vadd.f32 %v2130_v50, %v514_v37  ;;  %1776 = vmatprep.mubr.msk.f32.mxu1 %vm640_vm1, %v607_v33 }
 0x108   : > { %1777 = vmatmul.mubr.msk.f32.gmra.mrb[12].mxu1 %vm640_vm1, %v608_v35  ;;  %v610_v41 = vmax.f32 %v520_v36, 0.0 }
 0x109   : > { %v609_v39 = vmax.f32 %v515_v38, 0.0  ;;  %v1720_v40 = vpop.f32.mrb[18].mxu0 }
 0x10a   : > { %v530_v42 = vadd.f32 %v1720_v40, %v2130_v50  ;;  %v524_v43 = vpop.f32.mrb[19].mxu0 }
 0x10b   : > { %v525_v44 = vadd.f32 %v2130_v50, %v524_v43  ;;  %1779 = vmatprep.mubr.msk.f32.mxu1 %vm640_vm1, %v609_v39 }
 0x10c   : > { %1780 = vmatmul.mubr.msk.f32.gmra.mrb[14].mxu1 %vm640_vm1, %v610_v41  ;;  %v612_v47 = vmax.f32 %v530_v42, 0.0 }
 0x10d   : > { %v611_v45 = vmax.f32 %v525_v44, 0.0  ;;  %v1723_v46 = vpop.f32.mrb[20].mxu0 }
 0x10e   : > { %v540_v48 = vadd.f32 %v1723_v46, %v2130_v50  ;;  %v534_v49 = vpop.f32.mrb[21].mxu0 }
 0x10f   : > { %v535_v51 = vadd.f32 %v2130_v50, %v534_v49  ;;  %1782 = vmatprep.mubr.msk.f32.mxu1 %vm640_vm1, %v611_v45 }
 0x110   : > { %1783 = vmatmul.mubr.msk.f32.gmra.mrb[16].mxu1 %vm640_vm1, %v612_v47  ;;  %v614_v54 = vmax.f32 %v540_v48, 0.0 }
 0x111   : > { %v613_v52 = vmax.f32 %v535_v51, 0.0  ;;  %v1726_v53 = vpop.f32.mrb[22].mxu0 }
 0x112   : > { %v550_v55 = vadd.f32 %v1726_v53, %v2130_v50  ;;  %v544_v56 = vpop.f32.mrb[23].mxu0 }
 0x113   : > { %v545_v57 = vadd.f32 %v2130_v50, %v544_v56  ;;  %1785 = vmatprep.mubr.msk.f32.mxu1 %vm640_vm1, %v613_v52 }
 0x114   : > { %1786 = vmatmul.mubr.msk.f32.gmra.mrb[18].mxu1 %vm640_vm1, %v614_v54  ;;  %v616_v60 = vmax.f32 %v550_v55, 0.0 }
 0x115   : > { %v615_v58 = vmax.f32 %v545_v57, 0.0  ;;  %v1729_v59 = vpop.f32.mrb[24].mxu0 }
 0x116   : > { %v560_v61 = vadd.f32 %v1729_v59, %v2130_v50  ;;  %v554_v62 = vpop.f32.mrb[25].mxu0 }
 0x117   : > { %v555_v63 = vadd.f32 %v2130_v50, %v554_v62  ;;  %1788 = vmatprep.mubr.msk.f32.mxu1 %vm640_vm1, %v615_v58 }
 0x118   : > { %1789 = vmatmul.mubr.msk.f32.gmra.mrb[20].mxu1 %vm640_vm1, %v616_v60  ;;  %v618_v2 = vmax.f32 %v560_v61, 0.0 }
 0x119   : > { %v617_v0 = vmax.f32 %v555_v63, 0.0  ;;  %v1732_v1 = vpop.f32.mrb[26].mxu0 }
 0x11a   : > { %v570_v3 = vadd.f32 %v1732_v1, %v2130_v50  ;;  %v564_v4 = vpop.f32.mrb[27].mxu0 }
 0x11b   : > { %v565_v5 = vadd.f32 %v2130_v50, %v564_v4  ;;  %1791 = vmatprep.mubr.msk.f32.mxu1 %vm640_vm1, %v617_v0 }
 0x11c   : > { %1792 = vmatmul.mubr.msk.f32.gmra.mrb[22].mxu1 %vm640_vm1, %v618_v2  ;;  %v620_v8 = vmax.f32 %v570_v3, 0.0 }
 0x11d   : > { %v619_v6 = vmax.f32 %v565_v5, 0.0  ;;  %v1735_v7 = vpop.f32.mrb[28].mxu0 }
 0x11e   : > { %v580_v9 = vadd.f32 %v1735_v7, %v2130_v50  ;;  %v574_v10 = vpop.f32.mrb[29].mxu0 }
 0x11f   : > { %v575_v11 = vadd.f32 %v2130_v50, %v574_v10  ;;  %1794 = vmatprep.mubr.msk.f32.mxu1 %vm640_vm1, %v619_v6 }
 0x120   : > { %1795 = vmatmul.mubr.msk.f32.gmra.mrb[24].mxu1 %vm640_vm1, %v620_v8  ;;  %v622_v14 = vmax.f32 %v580_v9, 0.0 }
 0x121   : > { %v621_v12 = vmax.f32 %v575_v11, 0.0  ;;  %v1738_v13 = vpop.f32.mrb[30].mxu0 }
 0x122   : > { %v590_v15 = vadd.f32 %v1738_v13, %v2130_v50  ;;  %v584_v16 = vpop.f32.mrb[31].mxu0 }
 0x123   : > { %v585_v17 = vadd.f32 %v2130_v50, %v584_v16  ;;  %1797 = vmatprep.mubr.msk.f32.mxu1 %vm640_vm1, %v621_v12 }
 0x124   : > { %1798 = vmatmul.mubr.msk.f32.gmra.mrb[26].mxu1 %vm640_vm1, %v622_v14  ;;  %v624_v19 = vmax.f32 %v590_v15, 0.0 }
 0x125   : > { %v623_v18 = vmax.f32 %v585_v17, 0.0 }
 0x127   : > { %1800 = vmatprep.mubr.msk.f32.mxu1 %vm640_vm1, %v623_v18 }
 0x128   : > { %1801 = vmatmul.mubr.msk.f32.gmra.mrb[28].mxu1 %vm640_vm1, %v624_v19 }
 0x1bf   : > { %v1757_v21 = vpop.f32.mrb[32].mxu0 }
 0x1c0   : > { %v2202_v22 = vadd.f32 %v1757_v21, %v2199_v20  ;;  %v803_v50 = vpop.f32.mrb[33].mxu0 }
 0x1c1   : > { %v2205_v23 = vadd.f32 %v2199_v20, %v803_v50 }
 0x1c2   : > { %v995_v24 = vand.u32 2147483647, %v2202_v22  ;;  %v963_v0 = vmin.f32 %v2202_v22, 0.0 }
 0x1c3   : > { %v994_v25 = vand.u32 2147483647, %v2205_v23  ;;  %v1760_v26 = vpop.f32.mrb[0].mxu1  ;;  %v962_v2 = vmin.f32 %v2205_v23, 0.0 }
 0x1c4   : > { %v1027_v27 = vsub.f32 0.0, %v995_v24  ;;  %v2210_v28 = vadd.f32 %v1760_v26, %v2199_v20  ;;  %v813_v29 = vpop.f32.mrb[1].mxu1 }
 0x1c5   : > { %v1026_v30 = vsub.f32 0.0, %v994_v25  ;;  %v2213_v31 = vadd.f32 %v2199_v20, %v813_v29 }
 0x1c6   : > { %v1060_v32 = vmul.f32 1.442695, %v1027_v27  ;;  %v997_v33 = vand.u32 2147483647, %v2210_v28  ;;  %v965_v3 = vmin.f32 %v2210_v28, 0.0 }
 0x1c7   : > { %v1058_v34 = vmul.f32 1.442695, %v1026_v30  ;;  %v996_v35 = vand.u32 2147483647, %v2213_v31  ;;  %v1763_v36 = vpop.f32.mrb[2].mxu1  ;;  %v964_v8 = vmin.f32 %v2213_v31, 0.0 }
 0x1c8   : > { %1843 = vpow2.f32 %v1060_v32  ;;  %v1029_v37 = vsub.f32 0.0, %v997_v33  ;;  %v2218_v38 = vadd.f32 %v1763_v36, %v2199_v20  ;;  %v823_v39 = vpop.f32.mrb[3].mxu1 }
 0x1c9   : > { %1845 = vpow2.f32 %v1058_v34  ;;  %v1028_v40 = vsub.f32 0.0, %v996_v35  ;;  %v2221_v41 = vadd.f32 %v2199_v20, %v823_v39 }
 0x1ca   : > { %v1064_v42 = vmul.f32 1.442695, %v1029_v37  ;;  %v999_v43 = vand.u32 2147483647, %v2218_v38  ;;  %v967_v9 = vmin.f32 %v2218_v38, 0.0 }
 0x1cb   : > { %v1062_v44 = vmul.f32 1.442695, %v1028_v40  ;;  %v998_v45 = vand.u32 2147483647, %v2221_v41  ;;  %v1766_v46 = vpop.f32.mrb[4].mxu1  ;;  %v966_v21 = vmin.f32 %v2221_v41, 0.0 }
 0x1cc   : > { %1847 = vpow2.f32 %v1064_v42  ;;  %v1031_v47 = vsub.f32 0.0, %v999_v43  ;;  %v2226_v48 = vadd.f32 %v1766_v46, %v2199_v20  ;;  %v833_v49 = vpop.f32.mrb[5].mxu1 }
 0x1cd   : > { %1849 = vpow2.f32 %v1062_v44  ;;  %v1030_v51 = vsub.f32 0.0, %v998_v45  ;;  %v2229_v52 = vadd.f32 %v2199_v20, %v833_v49 }
 0x1ce   : > { %v1068_v53 = vmul.f32 1.442695, %v1031_v47  ;;  %v1001_v54 = vand.u32 2147483647, %v2226_v48  ;;  %v969_v32 = vmin.f32 %v2226_v48, 0.0 }
 0x1cf   : > { %v1066_v55 = vmul.f32 1.442695, %v1030_v51  ;;  %v1769_v56 = vpop.f32.mrb[6].mxu1  ;;  %v1000_v59 = vand.u32 2147483647, %v2229_v52 }
 0x1d0   : > { %1851 = vpow2.f32 %v1068_v53  ;;  %v1033_v57 = vsub.f32 0.0, %v1001_v54  ;;  %v843_v58 = vpop.f32.mrb[7].mxu1  ;;  %v2234_v62 = vadd.f32 %v1769_v56, %v2199_v20 }
 0x1d1   : > { %1853 = vpow2.f32 %v1066_v55  ;;  %v1032_v10 = vsub.f32 0.0, %v1000_v59  ;;  %v2245_v15 = vadd.f32 %v2199_v20, %v843_v58 }
 0x1d2   : > { %v1844_v60 = vpop.eup %1843  ;;  %v1072_v61 = vmul.f32 1.442695, %v1033_v57  ;;  %v1003_v14 = vand.u32 2147483647, %v2234_v62 }
 0x1d3   : > { %v1846_v63 = vpop.eup %1845  ;;  %v1131_v1 = vadd.f32 1.0, %v1844_v60  ;;  %v1134_v4 = vmul.f32 -0.5, %v1844_v60  ;;  %v1772_v7 = vpop.f32.mrb[8].mxu1  ;;  %v1137_v13 = vand.u32 2147483647, %v1844_v60 }
 0x1d4   : > { %v1122_v5 = vadd.f32 1.0, %v1846_v63  ;;  %v1125_v6 = vmul.f32 -0.5, %v1846_v63  ;;  %1855 = vpow2.f32 %v1072_v61  ;;  %v2241_v11 = vpop.f32.mrb[9].mxu1  ;;  %v1128_v17 = vand.u32 2147483647, %v1846_v63 }
 0x1d5   : > { %1857 = vlog2.f32 %v1131_v1  ;;  %v1135_v24 = vadd.f32 1.0, %v1134_v4  ;;  %v1070_v33 = vmul.f32 1.442695, %v1032_v10  ;;  %vm2253_vm2 = vcmp.lt.f32.partialorder %v1137_v13, 0.0004427343 }
 0x1d6   : > { %v1848_v12 = vpop.eup %1847  ;;  %1859 = vlog2.f32 %v1122_v5  ;;  %v1126_v25 = vadd.f32 1.0, %v1125_v6  ;;  %v1035_v36 = vsub.f32 0.0, %v1003_v14  ;;  %v1002_v37 = vand.u32 2147483647, %v2245_v15 }
 0x1d7   : > { %v1850_v16 = vpop.eup %1849  ;;  %v1149_v18 = vadd.f32 1.0, %v1848_v12  ;;  %v1152_v19 = vmul.f32 -0.5, %v1848_v12  ;;  %v2248_v50 = vpop.f32.mrb[10].mxu1  ;;  %v1155_v30 = vand.u32 2147483647, %v1848_v12  ;;  %v1136_v46 = vmul.f32 %v1844_v60, %v1135_v24 }
 0x1d8   : > { %v1140_v26 = vadd.f32 1.0, %v1850_v16  ;;  %v1143_v27 = vmul.f32 -0.5, %v1850_v16  ;;  %v2250_v29 = vpop.f32.mrb[11].mxu1  ;;  %v1146_v43 = vand.u32 2147483647, %v1850_v16  ;;  %v1127_v47 = vmul.f32 %v1846_v63, %v1126_v25 }
 0x1d9   : > { %1861 = vlog2.f32 %v1149_v18  ;;  %v1153_v40 = vadd.f32 1.0, %v1152_v19  ;;  %vm2262_vm3 = vcmp.lt.f32.partialorder %v1128_v17, 0.0004427343  ;;  %vm2269_vm4 = vcmp.lt.f32.partialorder %v1155_v30, 0.0004427343 }
 0x1da   : > { %v1852_v34 = vpop.eup %1851  ;;  %1863 = vlog2.f32 %v1140_v26  ;;  %v1144_v42 = vadd.f32 1.0, %v1143_v27  ;;  %v1034_v56 = vsub.f32 0.0, %v1002_v37  ;;  %v1076_v59 = vmul.f32 1.442695, %v1035_v36 }
 0x1db   : > { %v2258_v39 = vpop.eup %1853  ;;  %v1167_v44 = vadd.f32 1.0, %v1852_v34  ;;  %v2260_v45 = vpop.f32.mrb[12].mxu1  ;;  %v1170_v55 = vmul.f32 -0.5, %v1852_v34  ;;  %v1173_v58 = vand.u32 2147483647, %v1852_v34  ;;  %v2276_v60 = vadd.f32 %v1772_v7, %v2199_v20 }
 0x1dc   : > { %v1158_v51 = vadd.f32 1.0, %v2258_v39  ;;  %v2267_v53 = vpop.f32.mrb[13].mxu1  ;;  %v1154_v63 = vmul.f32 %v1848_v12, %v1153_v40  ;;  %v1145_v1 = vmul.f32 %v1850_v16, %v1144_v42  ;;  %vm2278_vm5 = vcmp.lt.f32.partialorder %v1146_v43, 0.0004427343 }
 0x1dd   : > { %1865 = vlog2.f32 %v1167_v44  ;;  %v1161_v14 = vmul.f32 -0.5, %v2258_v39  ;;  %v1074_v17 = vmul.f32 1.442695, %v1034_v56  ;;  %v1171_v19 = vadd.f32 1.0, %v1170_v55 }
 0x1de   : > { %v2273_v57 = vpop.eup %1855  ;;  %1867 = vlog2.f32 %v1158_v51  ;;  %v1164_v12 = vand.u32 2147483647, %v2258_v39  ;;  %vm2298_vm6 = vcmp.lt.f32.partialorder %v1173_v58, 0.0004427343  ;;  %v1005_v25 = vand.u32 2147483647, %v2276_v60 }
 0x1df   : > { %v1858_v61 = vpop.eup %1857  ;;  %v1185_v5 = vadd.f32 1.0, %v2273_v57  ;;  %v2283_v6 = vpop.f32.mrb[14].mxu1  ;;  %1869 = vpow2.f32 %v1070_v33  ;;  %v1188_v33 = vmul.f32 -0.5, %v2273_v57  ;;  %v2314_v43 = vadd.f32 %v2199_v20, %v2241_v11 }
 0x1e0   : > { %v1860_v10 = vpop.eup %1859  ;;  %v1133_v13 = vmul.f32 0.6931472, %v1858_v61  ;;  %v2286_v7 = vpop.f32.mrb[15].mxu1  ;;  %v1037_v42 = vsub.f32 0.0, %v1005_v25  ;;  %v1172_v44 = vmul.f32 %v1852_v34, %v1171_v19  ;;  %v2350_v4 = vadd.f32 %v2260_v45, %v2199_v20 }
 0x1e1   : > { %v1124_v18 = vmul.f32 0.6931472, %v1860_v10  ;;  %1871 = vlog2.f32 %v1185_v5  ;;  %v1004_v49 = vand.u32 2147483647, %v2314_v43  ;;  %vm1165_vm7 = vcmp.lt.f32.partialorder %v1164_v12, 0.0004427343 }
 0x1e2   : > { %v1139_v16 = vsel %vm2253_vm2, %v1136_v46, %v1133_v13  ;;  %1873 = vpow2.f32 %v1076_v59  ;;  %v1162_v46 = vadd.f32 1.0, %v1161_v14  ;;  %v1080_v11 = vmul.f32 1.442695, %v1037_v42 }
 0x1e3   : > { %v1862_v26 = vpop.eup %1861  ;;  %v1411_v27 = vsub.f32 %v963_v0, %v1139_v16  ;;  %v1130_v30 = vsel %vm2262_vm3, %v1127_v47, %v1124_v18  ;;  %1875 = vpow2.f32 %v1074_v17  ;;  %v2308_v35 = vpop.f32.mrb[16].mxu1  ;;  %v2322_v47 = vadd.f32 %v2248_v50, %v2199_v20 }
 0x1e4   : > { %v1864_v36 = vpop.eup %1863  ;;  %v1410_v37 = vsub.f32 %v962_v2, %v1130_v30  ;;  %v1151_v40 = vmul.f32 0.6931472, %v1862_v26  ;;  %v2316_v22 = vpop.f32.mrb[17].mxu1  ;;  %v1191_v2 = vand.u32 2147483647, %v2273_v57  ;;  %v1189_v50 = vadd.f32 1.0, %v1188_v33 }
 0x1e5   : > { %1443 = vst.msk [vmem:[%s2294_s7 + $0x8] sm:$0xff] %vm271_vm0, %v1411_v27  ;;  %v1142_v0 = vmul.f32 0.6931472, %v1864_v36  ;;  %v1007_v56 = vand.u32 2147483647, %v2322_v47  ;;  %1877 = vpow2.f32 %v1080_v11  ;;  %v971_v42 = vmin.f32 %v2234_v62, 0.0 }
 0x1e6   : > { %1442 = vst.msk [vmem:[%s2294_s7] sm:$0xff] %vm271_vm0, %v1410_v37  ;;  %v1157_v23 = vsel %vm2269_vm4, %v1154_v63, %v1151_v40  ;;  %v1036_v63 = vsub.f32 0.0, %v1004_v49  ;;  %vm2358_vm8 = vcmp.lt.f32.partialorder %v1191_v2, 0.0004427343  ;;  %v1190_v14 = vmul.f32 %v2273_v57, %v1189_v50 }
 0x1e7   : > { %v1866_v51 = vpop.eup %1865  ;;  %v1413_v34 = vsub.f32 %v965_v3, %v1157_v23  ;;  %v1148_v55 = vsel %vm2278_vm5, %v1145_v1, %v1142_v0  ;;  %v2335_v58 = vpop.f32.mrb[18].mxu1  ;;  %v1163_v3 = vmul.f32 %v2258_v39, %v1162_v46  ;;  %v2346_v1 = vadd.f32 %v2199_v20, %v2250_v29 }
 0x1e8   : > { %v1868_v54 = vpop.eup %1867  ;;  %v1412_v59 = vsub.f32 %v964_v8, %v1148_v55  ;;  %v1169_v61 = vmul.f32 0.6931472, %v1866_v51  ;;  %v2339_v5 = vpop.f32.mrb[19].mxu1  ;;  %v1078_v39 = vmul.f32 1.442695, %v1036_v63  ;;  %v1039_v24 = vsub.f32 0.0, %v1007_v56 }
 0x1e9   : > { %1445 = vst.msk [vmem:[%s2294_s7 + $0x18] sm:$0xff] %vm271_vm0, %v1413_v34  ;;  %v1160_v28 = vmul.f32 0.6931472, %v1868_v54  ;;  %v2352_v31 = vpop.eup %1869  ;;  %v1009_v57 = vand.u32 2147483647, %v2350_v4  ;;  %v970_v0 = vmin.f32 %v2245_v15, 0.0  ;;  %v2398_v51 = vadd.f32 %v2199_v20, %v2267_v53 }
 0x1ea   : > { %1444 = vst.msk [vmem:[%s2294_s7 + $0x10] sm:$0xff] %vm271_vm0, %v1412_v59  ;;  %v1175_v8 = vsel %vm2298_vm6, %v1172_v44, %v1169_v61  ;;  %v1176_v17 = vadd.f32 1.0, %v2352_v31  ;;  %1879 = vpow2.f32 %v1078_v39  ;;  %v1179_v27 = vmul.f32 -0.5, %v2352_v31 }
 0x1eb   : > { %v1872_v29 = vpop.eup %1871  ;;  %v1415_v13 = vsub.f32 %v967_v9, %v1175_v8  ;;  %v1166_v45 = vsel %vm1165_vm7, %v1163_v3, %v1160_v28  ;;  %v2366_v18 = vpop.f32.mrb[20].mxu1  ;;  %v1006_v9 = vand.u32 2147483647, %v2346_v1  ;;  %v1182_v36 = vand.u32 2147483647, %v2352_v31 }
 0x1ec   : > { %v1874_v19 = vpop.eup %1873  ;;  %v1414_v12 = vsub.f32 %v966_v21, %v1166_v45  ;;  %v1187_v16 = vmul.f32 0.6931472, %v1872_v29  ;;  %v2370_v25 = vpop.f32.mrb[21].mxu1  ;;  %1881 = vlog2.f32 %v1176_v17  ;;  %v968_v21 = vmin.f32 %v2229_v52, 0.0 }
 0x1ed   : > { %v1876_v26 = vpop.eup %1875  ;;  %1447 = vst.msk [vmem:[%s2294_s7 + $0x28] sm:$0xff] %vm271_vm0, %v1415_v13  ;;  %v1203_v38 = vadd.f32 1.0, %v1874_v19  ;;  %v1206_v37 = vmul.f32 -0.5, %v1874_v19  ;;  %v973_v44 = vmin.f32 %v2276_v60, 0.0  ;;  %v1084_v48 = vmul.f32 1.442695, %v1039_v24 }
 0x1ee   : > { %1446 = vst.msk [vmem:[%s2294_s7 + $0x20] sm:$0xff] %vm271_vm0, %v1414_v12  ;;  %v1193_v41 = vsel %vm2358_vm8, %v1190_v14, %v1187_v16  ;;  %v1194_v30 = vadd.f32 1.0, %v1876_v26  ;;  %v1197_v46 = vmul.f32 -0.5, %v1876_v26  ;;  %v1041_v23 = vsub.f32 0.0, %v1009_v57 }
 0x1ef   : > { %v1417_v33 = vsub.f32 %v969_v32, %v1193_v41  ;;  %1883 = vlog2.f32 %v1203_v38  ;;  %v2385_v40 = vpop.f32.mrb[22].mxu1  ;;  %v1038_v32 = vsub.f32 0.0, %v1006_v9  ;;  %v2394_v2 = vpop.eup %1877  ;;  %v1180_v11 = vadd.f32 1.0, %v1179_v27 }
 0x1f0   : > { %1885 = vlog2.f32 %v1194_v30  ;;  %v2390_v52 = vpop.f32.mrb[23].mxu1  ;;  %v1209_v49 = vand.u32 2147483647, %v1874_v19  ;;  %v2402_v34 = vadd.f32 %v2283_v6, %v2199_v20  ;;  %vm2404_vm9 = vcmp.lt.f32.partialorder %v1182_v36, 0.0004427343 }
 0x1f1   : > { %1449 = vst.msk [vmem:[%s2294_s7 + $0x38] sm:$0xff] %vm271_vm0, %v1417_v33  ;;  %v1207_v50 = vadd.f32 1.0, %v1206_v37  ;;  %v1221_v56 = vadd.f32 1.0, %v2394_v2  ;;  %1887 = vpow2.f32 %v1084_v48  ;;  %v972_v59 = vmin.f32 %v2314_v43, 0.0 }
 0x1f2   : > { %v1082_v61 = vmul.f32 1.442695, %v1038_v32  ;;  %v1088_v63 = vmul.f32 1.442695, %v1041_v23  ;;  %v1198_v28 = vadd.f32 1.0, %v1197_v46  ;;  %v1181_v10 = vmul.f32 %v2352_v31, %v1180_v11 }
 0x1f3   : > { %v2409_v54 = vpop.f32.mrb[24].mxu1  ;;  %v1200_v3 = vand.u32 2147483647, %v1876_v26  ;;  %1889 = vlog2.f32 %v1221_v56  ;;  %v1008_v6 = vand.u32 2147483647, %v2398_v51  ;;  %v1208_v45 = vmul.f32 %v1874_v19, %v1207_v50 }
 0x1f4   : > { %v2412_v53 = vpop.f32.mrb[25].mxu1  ;;  %v2415_v8 = vpop.eup %1879  ;;  %vm2418_vm10 = vcmp.lt.f32.partialorder %v1209_v49, 0.0004427343  ;;  %1891 = vpow2.f32 %v1082_v61  ;;  %v1011_v29 = vand.u32 2147483647, %v2402_v34  ;;  %v1224_v14 = vmul.f32 -0.5, %v2394_v2 }
 0x1f5   : > { %v1212_v17 = vadd.f32 1.0, %v2415_v8  ;;  %v2427_v12 = vadd.f32 %v2199_v20, %v2286_v7  ;;  %1893 = vpow2.f32 %v1088_v63  ;;  %v1040_v24 = vsub.f32 0.0, %v1008_v6 }
 0x1f6   : > { %v1882_v13 = vpop.eup %1881  ;;  %v1043_v38 = vsub.f32 0.0, %v1011_v29  ;;  %v1199_v41 = vmul.f32 %v1876_v26, %v1198_v28  ;;  %vm2433_vm11 = vcmp.lt.f32.partialorder %v1200_v3, 0.0004427343  ;;  %v1227_v27 = vand.u32 2147483647, %v2394_v2 }
 0x1f7   : > { %v2429_v16 = vpop.f32.mrb[26].mxu1  ;;  %v1178_v31 = vmul.f32 0.6931472, %v1882_v13  ;;  %1895 = vlog2.f32 %v1212_v17  ;;  %v1086_v36 = vmul.f32 1.442695, %v1040_v24  ;;  %v1225_v32 = vadd.f32 1.0, %v1224_v14 }
 0x1f8   : > { %v2431_v9 = vpop.f32.mrb[27].mxu1  ;;  %v1092_v37 = vmul.f32 1.442695, %v1043_v38  ;;  %v1010_v26 = vand.u32 2147483647, %v2427_v12  ;;  %v1215_v49 = vmul.f32 -0.5, %v2415_v8  ;;  %v2448_v55 = vadd.f32 %v2308_v35, %v2199_v20 }
 0x1f9   : > { %v1884_v57 = vpop.eup %1883  ;;  %v1184_v7 = vsel %vm2404_vm9, %v1181_v10, %v1178_v31  ;;  %1897 = vpow2.f32 %v1086_v36  ;;  %v975_v35 = vmin.f32 %v2322_v47, 0.0  ;;  %v2463_v6 = vadd.f32 %v2199_v20, %v2316_v22 }
 0x1fa   : > { %v1886_v30 = vpop.eup %1885  ;;  %v1205_v33 = vmul.f32 0.6931472, %v1884_v57  ;;  %v1416_v46 = vsub.f32 %v968_v21, %v1184_v7  ;;  %1899 = vpow2.f32 %v1092_v37  ;;  %v1042_v63 = vsub.f32 0.0, %v1010_v26 }
 0x1fb   : > { %v1196_v48 = vmul.f32 0.6931472, %v1886_v30  ;;  %v2441_v23 = vpop.f32.mrb[28].mxu1  ;;  %v1888_v21 = vpop.eup %1887  ;;  %vm2467_vm12 = vcmp.lt.f32.partialorder %v1227_v27, 0.0004427343  ;;  %v1216_v13 = vadd.f32 1.0, %v1215_v49 }
 0x1fc   : > { %v1211_v11 = vsel %vm2418_vm10, %v1208_v45, %v1205_v33  ;;  %v2450_v50 = vpop.f32.mrb[29].mxu1  ;;  %1448 = vst.msk [vmem:[%s2294_s7 + $0x30] sm:$0xff] %vm271_vm0, %v1416_v46  ;;  %v1239_v3 = vadd.f32 1.0, %v1888_v21  ;;  %v1013_v39 = vand.u32 2147483647, %v2448_v55  ;;  %v1242_v45 = vmul.f32 -0.5, %v1888_v21 }
 0x1fd   : > { %v1419_v56 = vsub.f32 %v971_v42, %v1211_v11  ;;  %v1202_v61 = vsel %vm2433_vm11, %v1199_v41, %v1196_v48  ;;  %v1890_v10 = vpop.eup %1889  ;;  %v1090_v42 = vmul.f32 1.442695, %v1042_v63  ;;  %v1218_v22 = vand.u32 2147483647, %v2415_v8 }
 0x1fe   : > { %v1418_v28 = vsub.f32 %v970_v0, %v1202_v61  ;;  %v1892_v29 = vpop.eup %1891  ;;  %v1223_v15 = vmul.f32 0.6931472, %v1890_v10  ;;  %v1226_v0 = vmul.f32 %v2394_v2, %v1225_v32  ;;  %1901 = vlog2.f32 %v1239_v3 }
 0x1ff   : > { %1451 = vst.msk [vmem:[%s2294_s7 + $0x48] sm:$0xff] %vm271_vm0, %v1419_v56  ;;  %v1230_v14 = vadd.f32 1.0, %v1892_v29  ;;  %1903 = vpow2.f32 %v1090_v42  ;;  %v1894_v17 = vpop.eup %1893  ;;  %v974_v24 = vmin.f32 %v2346_v1, 0.0  ;;  %v1233_v38 = vmul.f32 -0.5, %v1892_v29 }
 0x200   : > { %1450 = vst.msk [vmem:[%s2294_s7 + $0x40] sm:$0xff] %vm271_vm0, %v1418_v28  ;;  %v1229_v31 = vsel %vm2467_vm12, %v1226_v0, %v1223_v15  ;;  %v1012_v57 = vand.u32 2147483647, %v2463_v6  ;;  %v977_v19 = vmin.f32 %v2350_v4, 0.0  ;;  %v1045_v27 = vsub.f32 0.0, %v1013_v39 }
 0x201   : > { %v1896_v41 = vpop.eup %1895  ;;  %v1421_v2 = vsub.f32 %v973_v44, %v1229_v31  ;;  %1905 = vlog2.f32 %v1230_v14  ;;  %v1217_v7 = vmul.f32 %v2415_v8, %v1216_v13  ;;  %v1257_v33 = vadd.f32 1.0, %v1894_v17 }
 0x202   : > { %v1214_v30 = vmul.f32 0.6931472, %v1896_v41  ;;  %v1260_v36 = vmul.f32 -0.5, %v1894_v17  ;;  %vm1219_vm13 = vcmp.lt.f32.partialorder %v1218_v22, 0.0004427343  ;;  %v1243_v37 = vadd.f32 1.0, %v1242_v45 }
 0x203   : > { %1453 = vst.msk [vmem:[%s2294_s7 + $0x58] sm:$0xff] %vm271_vm0, %v1421_v2  ;;  %v1245_v46 = vand.u32 2147483647, %v1888_v21  ;;  %v1044_v48 = vsub.f32 0.0, %v1012_v57  ;;  %v2486_v32 = vpop.eup %1897  ;;  %v1234_v44 = vadd.f32 1.0, %v1233_v38  ;;  %1907 = vlog2.f32 %v1257_v33 }
 0x204   : > { %v1220_v60 = vsel %vm1219_vm13, %v1217_v7, %v1214_v30  ;;  %v1236_v26 = vand.u32 2147483647, %v1892_v29  ;;  %v2488_v11 = vpop.eup %1899  ;;  %v1248_v49 = vadd.f32 1.0, %v2486_v32  ;;  %v1096_v56 = vmul.f32 1.442695, %v1045_v27 }
 0x205   : > { %v1420_v8 = vsub.f32 %v972_v59, %v1220_v60  ;;  %v2495_v61 = vadd.f32 %v2335_v58, %v2199_v20  ;;  %v1261_v63 = vadd.f32 1.0, %v1260_v36  ;;  %v1263_v28 = vand.u32 2147483647, %v1894_v17 }
 0x206   : > { %v976_v3 = vmin.f32 %v2398_v51, 0.0  ;;  %v1275_v10 = vadd.f32 1.0, %v2488_v11  ;;  %v1244_v62 = vmul.f32 %v1888_v21, %v1243_v37  ;;  %vm2501_vm14 = vcmp.lt.f32.partialorder %v1245_v46, 0.0004427343 }
 0x207   : > { %1452 = vst.msk [vmem:[%s2294_s7 + $0x50] sm:$0xff] %vm271_vm0, %v1420_v8  ;;  %1909 = vlog2.f32 %v1248_v49  ;;  %v1094_v43 = vmul.f32 1.442695, %v1044_v48  ;;  %v1235_v39 = vmul.f32 %v1892_v29, %v1234_v44  ;;  %vm2505_vm15 = vcmp.lt.f32.partialorder %v1236_v26, 0.0004427343 }
 0x208   : > { %v1902_v59 = vpop.eup %1901  ;;  %v1251_v15 = vmul.f32 -0.5, %v2486_v32  ;;  %1911 = vlog2.f32 %v1275_v10  ;;  %v1254_v21 = vand.u32 2147483647, %v2486_v32  ;;  %v1015_v22 = vand.u32 2147483647, %v2495_v61 }
 0x209   : > { %v2510_v0 = vpop.eup %1903  ;;  %v1241_v13 = vmul.f32 0.6931472, %v1902_v59  ;;  %1913 = vpow2.f32 %v1096_v56  ;;  %v1262_v45 = vmul.f32 %v1894_v17, %v1261_v63  ;;  %vm2514_vm1 = vcmp.lt.f32.partialorder %v1263_v28, 0.0004427343 }
 0x20a   : > { %v1278_v29 = vmul.f32 -0.5, %v2488_v11  ;;  %v1266_v31 = vadd.f32 1.0, %v2510_v0  ;;  %1915 = vpow2.f32 %v1094_v43  ;;  %v1047_v41 = vsub.f32 0.0, %v1015_v22 }
 0x20b   : > { %v1906_v38 = vpop.eup %1905  ;;  %v1247_v57 = vsel %vm2501_vm14, %v1244_v62, %v1241_v13  ;;  %v2524_v2 = vadd.f32 %v2199_v20, %v2339_v5  ;;  %v1281_v30 = vand.u32 2147483647, %v2488_v11  ;;  %v1252_v7 = vadd.f32 1.0, %v1251_v15 }
 0x20c   : > { %v1423_v17 = vsub.f32 %v975_v35, %v1247_v57  ;;  %v1232_v27 = vmul.f32 0.6931472, %v1906_v38  ;;  %1917 = vlog2.f32 %v1266_v31  ;;  %vm2529_vm2 = vcmp.lt.f32.partialorder %v1254_v21, 0.0004427343 }
 0x20d   : > { %v1100_v36 = vmul.f32 1.442695, %v1047_v41  ;;  %v2535_v37 = vadd.f32 %v2366_v18, %v2199_v20  ;;  %v1908_v5 = vpop.eup %1907  ;;  %v1279_v35 = vadd.f32 1.0, %v1278_v29  ;;  %v1014_v46 = vand.u32 2147483647, %v2524_v2 }
 0x20e   : > { %1455 = vst.msk [vmem:[%s2294_s7 + $0x68] sm:$0xff] %vm271_vm0, %v1423_v17  ;;  %v1238_v47 = vsel %vm2505_vm15, %v1235_v39, %v1232_v27  ;;  %v2544_v48 = vadd.f32 %v2199_v20, %v2370_v25  ;;  %v1259_v44 = vmul.f32 0.6931472, %v1908_v5  ;;  %v1269_v18 = vmul.f32 -0.5, %v2510_v0 }
 0x20f   : > { %v1422_v60 = vsub.f32 %v974_v24, %v1238_v47  ;;  %1919 = vpow2.f32 %v1100_v36  ;;  %v979_v26 = vmin.f32 %v2402_v34, 0.0  ;;  %v1046_v8 = vsub.f32 0.0, %v1014_v46 }
 0x210   : > { %v1017_v49 = vand.u32 2147483647, %v2535_v37  ;;  %v1016_v56 = vand.u32 2147483647, %v2544_v48  ;;  %v1265_v25 = vsel %vm2514_vm1, %v1262_v45, %v1259_v44  ;;  %v1253_v1 = vmul.f32 %v2486_v32, %v1252_v7 }
 0x211   : > { %v1910_v63 = vpop.eup %1909  ;;  %1454 = vst.msk [vmem:[%s2294_s7 + $0x60] sm:$0xff] %vm271_vm0, %v1422_v60  ;;  %vm2557_vm3 = vcmp.lt.f32.partialorder %v1281_v30, 0.0004427343  ;;  %v2563_v34 = vadd.f32 %v2385_v40, %v2199_v20  ;;  %v1425_v10 = vsub.f32 %v977_v19, %v1265_v25  ;;  %v1098_v42 = vmul.f32 1.442695, %v1046_v8 }
 0x212   : > { %v1912_v28 = vpop.eup %1911  ;;  %v1250_v62 = vmul.f32 0.6931472, %v1910_v63  ;;  %v1049_v43 = vsub.f32 0.0, %v1017_v49  ;;  %v1280_v32 = vmul.f32 %v2488_v11, %v1279_v35  ;;  %v1270_v58 = vadd.f32 1.0, %v1269_v18 }
 0x213   : > { %v2567_v59 = vpop.eup %1913  ;;  %v1277_v39 = vmul.f32 0.6931472, %v1912_v28  ;;  %v1272_v15 = vand.u32 2147483647, %v2510_v0  ;;  %1457 = vst.msk [vmem:[%s2294_s7 + $0x78] sm:$0xff] %vm271_vm0, %v1425_v10  ;;  %v1048_v19 = vsub.f32 0.0, %v1016_v56  ;;  %1921 = vpow2.f32 %v1098_v42 }
 0x214   : > { %v1256_v40 = vsel %vm2529_vm2, %v1253_v1, %v1250_v62  ;;  %v1293_v4 = vadd.f32 1.0, %v2567_v59  ;;  %v1019_v13 = vand.u32 2147483647, %v2563_v34  ;;  %v2577_v21 = vpop.eup %1915  ;;  %v1104_v45 = vmul.f32 1.442695, %v1049_v43 }
 0x215   : > { %v1424_v11 = vsub.f32 %v976_v3, %v1256_v40  ;;  %v1283_v22 = vsel %vm2557_vm3, %v1280_v32, %v1277_v39  ;;  %v978_v31 = vmin.f32 %v2427_v12, 0.0  ;;  %v1271_v57 = vmul.f32 %v2510_v0, %v1270_v58 }
 0x216   : > { %v1918_v14 = vpop.eup %1917  ;;  %v1427_v29 = vsub.f32 %v979_v26, %v1283_v22  ;;  %1923 = vlog2.f32 %v1293_v4  ;;  %vm1273_vm4 = vcmp.lt.f32.partialorder %v1272_v15, 0.0004427343  ;;  %v1284_v51 = vadd.f32 1.0, %v2577_v21 }
 0x217   : > { %1456 = vst.msk [vmem:[%s2294_s7 + $0x70] sm:$0xff] %vm271_vm0, %v1424_v11  ;;  %v1268_v38 = vmul.f32 0.6931472, %v1918_v14  ;;  %1925 = vpow2.f32 %v1104_v45  ;;  %v1102_v3 = vmul.f32 1.442695, %v1048_v19  ;;  %v1051_v41 = vsub.f32 0.0, %v1019_v13 }
 0x218   : > { %1459 = vst.msk [vmem:[%s2294_s7 + $0x88] sm:$0xff] %vm271_vm0, %v1427_v29  ;;  %v2592_v17 = vadd.f32 %v2199_v20, %v2390_v52  ;;  %v1296_v30 = vmul.f32 -0.5, %v2567_v59  ;;  %1927 = vlog2.f32 %v1284_v51  ;;  %v2597_v0 = vadd.f32 %v2409_v54, %v2199_v20 }
 0x219   : > { %v1920_v12 = vpop.eup %1919  ;;  %v1274_v27 = vsel %vm1273_vm4, %v1271_v57, %v1268_v38  ;;  %1929 = vpow2.f32 %v1102_v3  ;;  %v1108_v36 = vmul.f32 1.442695, %v1051_v41  ;;  %v981_v5 = vmin.f32 %v2448_v55, 0.0 }
 0x21a   : > { %v1426_v7 = vsub.f32 %v978_v31, %v1274_v27  ;;  %v1311_v33 = vadd.f32 1.0, %v1920_v12  ;;  %v1287_v52 = vmul.f32 -0.5, %v2577_v21  ;;  %v1018_v47 = vand.u32 2147483647, %v2592_v17 }
 0x21b   : > { %v1297_v35 = vadd.f32 1.0, %v1296_v30  ;;  %v1021_v46 = vand.u32 2147483647, %v2597_v0  ;;  %v2607_v54 = vadd.f32 %v2199_v20, %v2412_v53  ;;  %v1299_v60 = vand.u32 2147483647, %v2567_v59 }
 0x21c   : > { %1458 = vst.msk [vmem:[%s2294_s7 + $0x80] sm:$0xff] %vm271_vm0, %v1426_v7  ;;  %1931 = vlog2.f32 %v1311_v33  ;;  %v980_v44 = vmin.f32 %v2463_v6, 0.0  ;;  %v1314_v18 = vmul.f32 -0.5, %v1920_v12  ;;  %v1050_v26 = vsub.f32 0.0, %v1018_v47 }
 0x21d   : > { %1933 = vpow2.f32 %v1108_v36  ;;  %v2611_v55 = vpop.eup %1921  ;;  %v1290_v8 = vand.u32 2147483647, %v2577_v21  ;;  %v983_v49 = vmin.f32 %v2495_v61, 0.0  ;;  %v1053_v56 = vsub.f32 0.0, %v1021_v46 }
 0x21e   : > { %v1020_v63 = vand.u32 2147483647, %v2607_v54  ;;  %v1288_v1 = vadd.f32 1.0, %v1287_v52  ;;  %v982_v53 = vmin.f32 %v2524_v2, 0.0  ;;  %v1302_v24 = vadd.f32 1.0, %v2611_v55 }
 0x21f   : > { %v1106_v28 = vmul.f32 1.442695, %v1050_v26  ;;  %v1298_v6 = vmul.f32 %v2567_v59, %v1297_v35  ;;  %v1317_v62 = vand.u32 2147483647, %v1920_v12  ;;  %vm1300_vm5 = vcmp.lt.f32.partialorder %v1299_v60, 0.0004427343 }
 0x220   : > { %v1924_v25 = vpop.eup %1923  ;;  %v1052_v42 = vsub.f32 0.0, %v1020_v63  ;;  %v1315_v39 = vadd.f32 1.0, %v1314_v18  ;;  %1935 = vlog2.f32 %v1302_v24  ;;  %v2623_v61 = vadd.f32 %v2429_v16, %v2199_v20 }
 0x221   : > { %v1295_v10 = vmul.f32 0.6931472, %v1924_v25  ;;  %v2619_v43 = vpop.eup %1925  ;;  %vm2625_vm6 = vcmp.lt.f32.partialorder %v1290_v8, 0.0004427343  ;;  %v1112_v40 = vmul.f32 1.442695, %v1053_v56  ;;  %v1289_v13 = vmul.f32 %v2577_v21, %v1288_v1 }
 0x222   : > { %v1928_v32 = vpop.eup %1927  ;;  %v1329_v59 = vadd.f32 1.0, %v2619_v43  ;;  %1937 = vpow2.f32 %v1106_v28  ;;  %vm2633_vm7 = vcmp.lt.f32.partialorder %v1317_v62, 0.0004427343  ;;  %v1305_v22 = vmul.f32 -0.5, %v2611_v55 }
 0x223   : > { %v1301_v58 = vsel %vm1300_vm5, %v1298_v6, %v1295_v10  ;;  %v1286_v19 = vmul.f32 0.6931472, %v1928_v32  ;;  %v2631_v11 = vpop.eup %1929  ;;  %v1110_v45 = vmul.f32 1.442695, %v1052_v42  ;;  %v1316_v31 = vmul.f32 %v1920_v12, %v1315_v39 }
 0x224   : > { %v1429_v4 = vsub.f32 %v981_v5, %v1301_v58  ;;  %1939 = vlog2.f32 %v1329_v59  ;;  %v1320_v21 = vadd.f32 1.0, %v2631_v11  ;;  %v1023_v38 = vand.u32 2147483647, %v2623_v61 }
 0x225   : > { %v1292_v29 = vsel %vm2625_vm6, %v1289_v13, %v1286_v19  ;;  %1941 = vpow2.f32 %v1112_v40  ;;  %v2648_v41 = vadd.f32 %v2199_v20, %v2431_v9  ;;  %v1332_v27 = vmul.f32 -0.5, %v2619_v43 }
 0x226   : > { %v1932_v14 = vpop.eup %1931  ;;  %1461 = vst.msk [vmem:[%s2294_s7 + $0x98] sm:$0xff] %vm271_vm0, %v1429_v4  ;;  %v1428_v51 = vsub.f32 %v980_v44, %v1292_v29  ;;  %1943 = vlog2.f32 %v1320_v21  ;;  %v2654_v12 = vadd.f32 %v2441_v23, %v2199_v20  ;;  %v1306_v33 = vadd.f32 1.0, %v1305_v22 }
 0x227   : > { %v2644_v57 = vpop.eup %1933  ;;  %v1313_v3 = vmul.f32 0.6931472, %v1932_v14  ;;  %v1308_v36 = vand.u32 2147483647, %v2611_v55  ;;  %1945 = vpow2.f32 %v1110_v45  ;;  %v1323_v5 = vmul.f32 -0.5, %v2631_v11 }
 0x228   : > { %v1347_v30 = vadd.f32 1.0, %v2644_v57  ;;  %1460 = vst.msk [vmem:[%s2294_s7 + $0x90] sm:$0xff] %vm271_vm0, %v1428_v51  ;;  %v1055_v52 = vsub.f32 0.0, %v1023_v38  ;;  %v985_v47 = vmin.f32 %v2535_v37, 0.0  ;;  %v1335_v35 = vand.u32 2147483647, %v2619_v43 }
 0x229   : > { %v1319_v7 = vsel %vm2633_vm7, %v1316_v31, %v1313_v3  ;;  %v984_v23 = vmin.f32 %v2544_v48, 0.0  ;;  %v1022_v46 = vand.u32 2147483647, %v2648_v41  ;;  %v1333_v44 = vadd.f32 1.0, %v1332_v27 }
 0x22a   : > { %v1431_v9 = vsub.f32 %v983_v49, %v1319_v7  ;;  %1947 = vlog2.f32 %v1347_v30  ;;  %v1936_v60 = vpop.eup %1935  ;;  %v1116_v18 = vmul.f32 1.442695, %v1055_v52  ;;  %v1025_v26 = vand.u32 2147483647, %v2654_v12 }
 0x22b   : > { %v2671_v8 = vadd.f32 %v2199_v20, %v2450_v50  ;;  %v1304_v49 = vmul.f32 0.6931472, %v1936_v60  ;;  %v1307_v37 = vmul.f32 %v2611_v55, %v1306_v33  ;;  %v1350_v56 = vmul.f32 -0.5, %v2644_v57 }
 0x22c   : > { %1463 = vst.msk [vmem:[%s2294_s7 + $0xa8] sm:$0xff] %vm271_vm0, %v1431_v9  ;;  %v1054_v63 = vsub.f32 0.0, %v1022_v46  ;;  %v2675_v48 = vpop.eup %1937  ;;  %vm1309_vm8 = vcmp.lt.f32.partialorder %v1308_v36, 0.0004427343  ;;  %v1324_v25 = vadd.f32 1.0, %v1323_v5  ;;  %1949 = vpow2.f32 %v1116_v18 }
 0x22d   : > { %v1024_v1 = vand.u32 2147483647, %v2671_v8  ;;  %v1310_v28 = vsel %vm1309_vm8, %v1307_v37, %v1304_v49  ;;  %v1326_v10 = vand.u32 2147483647, %v2631_v11  ;;  %v1338_v20 = vadd.f32 1.0, %v2675_v48 }
 0x22e   : > { %v1940_v24 = vpop.eup %1939  ;;  %v1057_v50 = vsub.f32 0.0, %v1025_v26  ;;  %v1430_v55 = vsub.f32 %v982_v53, %v1310_v28  ;;  %v1334_v62 = vmul.f32 %v2619_v43, %v1333_v44  ;;  %v1114_v42 = vmul.f32 1.442695, %v1054_v63 }
 0x22f   : > { %v1331_v6 = vmul.f32 0.6931472, %v1940_v24  ;;  %v1942_v39 = vpop.eup %1941  ;;  %vm1336_vm9 = vcmp.lt.f32.partialorder %v1335_v35, 0.0004427343  ;;  %v1351_v32 = vadd.f32 1.0, %v1350_v56  ;;  %1951 = vlog2.f32 %v1338_v20 }
 0x230   : > { %v1353_v58 = vand.u32 2147483647, %v2644_v57  ;;  %v1944_v15 = vpop.eup %1943  ;;  %1462 = vst.msk [vmem:[%s2294_s7 + $0xa0] sm:$0xff] %vm271_vm0, %v1430_v55  ;;  %v1325_v40 = vmul.f32 %v2631_v11, %v1324_v25  ;;  %v1365_v4 = vadd.f32 1.0, %v1942_v39  ;;  %v1056_v2 = vsub.f32 0.0, %v1024_v1 }
 0x231   : > { %v1337_v59 = vsel %vm1336_vm9, %v1334_v62, %v1331_v6  ;;  %v1946_v53 = vpop.eup %1945  ;;  %v1322_v13 = vmul.f32 0.6931472, %v1944_v15  ;;  %1953 = vpow2.f32 %v1114_v42  ;;  %v1120_v43 = vmul.f32 1.442695, %v1057_v50 }
 0x232   : > { %v1433_v19 = vsub.f32 %v985_v47, %v1337_v59  ;;  %vm1327_vm10 = vcmp.lt.f32.partialorder %v1326_v10, 0.0004427343  ;;  %v1341_v22 = vmul.f32 -0.5, %v2675_v48  ;;  %1955 = vlog2.f32 %v1365_v4 }
 0x233   : > { %v1356_v45 = vadd.f32 1.0, %v1946_v53  ;;  %v1328_v14 = vsel %vm1327_vm10, %v1325_v40, %v1322_v13  ;;  %v987_v29 = vmin.f32 %v2563_v34, 0.0  ;;  %v1352_v31 = vmul.f32 %v2644_v57, %v1351_v32 }
 0x234   : > { %v1948_v16 = vpop.eup %1947  ;;  %1465 = vst.msk [vmem:[%s2294_s7 + $0xb8] sm:$0xff] %vm271_vm0, %v1433_v19  ;;  %v1432_v21 = vsub.f32 %v984_v23, %v1328_v14  ;;  %vm1354_vm11 = vcmp.lt.f32.partialorder %v1353_v58, 0.0004427343  ;;  %v1118_v38 = vmul.f32 1.442695, %v1056_v2  ;;  %v1368_v3 = vmul.f32 -0.5, %v1942_v39 }
 0x235   : > { %v1349_v11 = vmul.f32 0.6931472, %v1948_v16  ;;  %1957 = vlog2.f32 %v1356_v45  ;;  %v1342_v7 = vadd.f32 1.0, %v1341_v22  ;;  %v1344_v33 = vand.u32 2147483647, %v2675_v48 }
 0x236   : > { %1959 = vpow2.f32 %v1120_v43  ;;  %v1950_v27 = vpop.eup %1949  ;;  %1464 = vst.msk [vmem:[%s2294_s7 + $0xb0] sm:$0xff] %vm271_vm0, %v1432_v21  ;;  %v1359_v34 = vmul.f32 -0.5, %v1946_v53  ;;  %v1369_v9 = vadd.f32 1.0, %v1368_v3  ;;  %v1371_v47 = vand.u32 2147483647, %v1942_v39 }
 0x237   : > { %v1355_v51 = vsel %vm1354_vm11, %v1352_v31, %v1349_v11  ;;  %1961 = vpow2.f32 %v1118_v38  ;;  %v1383_v36 = vadd.f32 1.0, %v1950_v27  ;;  %v1343_v52 = vmul.f32 %v2675_v48, %v1342_v7 }
 0x238   : > { %v1435_v30 = vsub.f32 %v987_v29, %v1355_v51  ;;  %v986_v23 = vmin.f32 %v2592_v17, 0.0  ;;  %vm1345_vm12 = vcmp.lt.f32.partialorder %v1344_v33, 0.0004427343  ;;  %v1360_v46 = vadd.f32 1.0, %v1359_v34 }
 0x239   : > { %v1952_v57 = vpop.eup %1951  ;;  %1963 = vlog2.f32 %v1383_v36  ;;  %v1362_v18 = vand.u32 2147483647, %v1946_v53  ;;  %v1386_v26 = vmul.f32 -0.5, %v1950_v27  ;;  %v1370_v63 = vmul.f32 %v1942_v39, %v1369_v9 }
 0x23a   : > { %1467 = vst.msk [vmem:[%s2294_s7 + $0xc8] sm:$0xff] %vm271_vm0, %v1435_v30  ;;  %v1340_v5 = vmul.f32 0.6931472, %v1952_v57  ;;  %v989_v1 = vmin.f32 %v2597_v0, 0.0  ;;  %vm1372_vm13 = vcmp.lt.f32.partialorder %v1371_v47, 0.0004427343  ;;  %v1361_v10 = vmul.f32 %v1946_v53, %v1360_v46 }
 0x23b   : > { %v1954_v35 = vpop.eup %1953  ;;  %v988_v24 = vmin.f32 %v2607_v54, 0.0  ;;  %vm1363_vm14 = vcmp.lt.f32.partialorder %v1362_v18, 0.0004427343  ;;  %v1387_v55 = vadd.f32 1.0, %v1386_v26  ;;  %v1389_v42 = vand.u32 2147483647, %v1950_v27 }
 0x23c   : > { %v1956_v60 = vpop.eup %1955  ;;  %v1346_v44 = vsel %vm1345_vm12, %v1343_v52, %v1340_v5  ;;  %v1374_v49 = vadd.f32 1.0, %v1954_v35  ;;  %v1377_v0 = vmul.f32 -0.5, %v1954_v35  ;;  %v991_v59 = vmin.f32 %v2623_v61, 0.0 }
 0x23d   : > { %v1434_v37 = vsub.f32 %v986_v23, %v1346_v44  ;;  %v1367_v56 = vmul.f32 0.6931472, %v1956_v60  ;;  %v1388_v15 = vmul.f32 %v1950_v27, %v1387_v55  ;;  %vm1390_vm15 = vcmp.lt.f32.partialorder %v1389_v42, 0.0004427343 }
 0x23e   : > { %1965 = vlog2.f32 %v1374_v49  ;;  %v1378_v40 = vadd.f32 1.0, %v1377_v0  ;;  %v1380_v53 = vand.u32 2147483647, %v1954_v35  ;;  %v990_v14 = vmin.f32 %v2648_v41, 0.0 }
 0x23f   : > { %v1958_v25 = vpop.eup %1957  ;;  %1466 = vst.msk [vmem:[%s2294_s7 + $0xc0] sm:$0xff] %vm271_vm0, %v1434_v37  ;;  %v1373_v17 = vsel %vm1372_vm13, %v1370_v63, %v1367_v56  ;;  %v993_v30 = vmin.f32 %v2654_v12, 0.0  ;;  %v992_v34 = vmin.f32 %v2671_v8, 0.0 }
 0x240   : > { %v1960_v48 = vpop.eup %1959  ;;  %v1358_v28 = vmul.f32 0.6931472, %v1958_v25  ;;  %v1437_v50 = vsub.f32 %v989_v1, %v1373_v17  ;;  %v1379_v22 = vmul.f32 %v1954_v35, %v1378_v40  ;;  %vm1381_vm1 = vcmp.lt.f32.partialorder %v1380_v53, 0.0004427343 }
 0x241   : > { %v1962_v20 = vpop.eup %1961  ;;  %v1401_v6 = vadd.f32 1.0, %v1960_v48  ;;  %v1404_v4 = vmul.f32 -0.5, %v1960_v48  ;;  %v1407_v29 = vand.u32 2147483647, %v1960_v48 }
 0x242   : > { %v1364_v62 = vsel %vm1363_vm14, %v1361_v10, %v1358_v28  ;;  %v1392_v39 = vadd.f32 1.0, %v1962_v20  ;;  %1469 = vst.msk [vmem:[%s2294_s7 + $0xd8] sm:$0xff] %vm271_vm0, %v1437_v50  ;;  %v1395_v19 = vmul.f32 -0.5, %v1962_v20  ;;  %v1398_v31 = vand.u32 2147483647, %v1962_v20 }
 0x243   : > { %v1436_v32 = vsub.f32 %v988_v24, %v1364_v62  ;;  %1967 = vlog2.f32 %v1401_v6  ;;  %v1964_v58 = vpop.eup %1963  ;;  %v1405_v45 = vadd.f32 1.0, %v1404_v4  ;;  %vm1408_vm2 = vcmp.lt.f32.partialorder %v1407_v29, 0.0004427343 }
 0x244   : > { %1969 = vlog2.f32 %v1392_v39  ;;  %v1385_v54 = vmul.f32 0.6931472, %v1964_v58  ;;  %v1396_v11 = vadd.f32 1.0, %v1395_v19  ;;  %vm1399_vm3 = vcmp.lt.f32.partialorder %v1398_v31, 0.0004427343 }
 0x245   : > { %1468 = vst.msk [vmem:[%s2294_s7 + $0xd0] sm:$0xff] %vm271_vm0, %v1436_v32  ;;  %v1406_v27 = vmul.f32 %v1960_v48, %v1405_v45 }
 0x246   : > { %v1391_v2 = vsel %vm1390_vm15, %v1388_v15, %v1385_v54  ;;  %v1397_v33 = vmul.f32 %v1962_v20, %v1396_v11 }
 0x247   : > { %v1439_v13 = vsub.f32 %v991_v59, %v1391_v2 }
 0x248   : > { %v1966_v43 = vpop.eup %1965 }
 0x249   : > { %1471 = vst.msk [vmem:[%s2294_s7 + $0xe8] sm:$0xff] %vm271_vm0, %v1439_v13  ;;  %v1376_v16 = vmul.f32 0.6931472, %v1966_v43 }
 0x24b   : > { %v1382_v61 = vsel %vm1381_vm1, %v1379_v22, %v1376_v16 }
 0x24c   : > { %v1438_v38 = vsub.f32 %v990_v14, %v1382_v61 }
 0x24d   : > { %v1968_v21 = vpop.eup %1967 }
 0x24e   : > { %v1970_v51 = vpop.eup %1969  ;;  %v1403_v3 = vmul.f32 0.6931472, %v1968_v21  ;;  %1470 = vst.msk [vmem:[%s2294_s7 + $0xe0] sm:$0xff] %vm271_vm0, %v1438_v38 }
 0x24f   : > { %v1394_v7 = vmul.f32 0.6931472, %v1970_v51 }
 0x250   : > { %v1409_v41 = vsel %vm1408_vm2, %v1406_v27, %v1403_v3 }
 0x251   : > { %v1441_v36 = vsub.f32 %v993_v30, %v1409_v41  ;;  %v1400_v57 = vsel %vm1399_vm3, %v1397_v33, %v1394_v7 }
 0x252   : > { %v1440_v9 = vsub.f32 %v992_v34, %v1400_v57 }
 0x253   : > { %1473 = vst.msk [vmem:[%s2294_s7 + $0xf8] sm:$0xff] %vm271_vm0, %v1441_v36 }
 0x254   : > { %1472 = vst.msk [vmem:[%s2294_s7 + $0xf0] sm:$0xff] %vm271_vm0, %v1440_v9 }
 0x255 PF: > { %s15_s18 = sadd.s32 1, %s1977_s18  }
 0x256   : > { %p12_p4 = scmp.ge.s32.totalorder %s15_s18, 6  }
 0x258   :  { %14 = sbr.rel (!%p12_p4) target bundleno = 1 (0x1), region = 70 }

</bundles_post_ra>
